<compile_context>
chip_gen: v5e
topology: v5e:2x2
jax: 0.10.0
libtpu: 0.0.40
codegen_flags: <defaults>
</compile_context>

<pallas_src>
import functools
import math

import jax
import jax.numpy as jnp
from jax import lax
from jax.experimental import pallas as pl
from jax.experimental.pallas import tpu as pltpu


def _round_up(x, n):
    return (x + n - 1) // n * n


# ---------------------------------------------------------------------------
# Prep kernel: L2-normalize rows of x (f32 accumulation) -> bf16 MXU operand.
# ---------------------------------------------------------------------------
def _normalize_rows_kernel(x_ref, o_ref):
    x = x_ref[...].astype(jnp.float32)
    ssq = jnp.sum(x * x, axis=-1, keepdims=True)
    # torch F.normalize: x / max(||x||, 1e-12)  ->  rsqrt(max(ssq, 1e-24))
    o_ref[...] = (x * lax.rsqrt(jnp.maximum(ssq, 1e-24))).astype(o_ref.dtype)


def _normalize_rows(x, tile_rows, out_dtype=jnp.bfloat16):
    n, d = x.shape
    assert n % tile_rows == 0
    return pl.pallas_call(
        _normalize_rows_kernel,
        out_shape=jax.ShapeDtypeStruct((n, d), out_dtype),
        grid=(n // tile_rows,),
        in_specs=[pl.BlockSpec((tile_rows, d), lambda i: (i, 0))],
        out_specs=pl.BlockSpec((tile_rows, d), lambda i: (i, 0)),
        compiler_params=pltpu.CompilerParams(
            dimension_semantics=("parallel",)),
    )(x)


# ---------------------------------------------------------------------------
# Main ArcFace kernel.
# ---------------------------------------------------------------------------
def _arcface_kernel(has_ref, xn_ref, w_ref, lab_ref, o_ref, wn_ref,
                    *, s, m, tm, tn, nc, x_resident):
    j = pl.program_id(0)   # class tile (outer axis)
    i = pl.program_id(1)   # batch tile (inner axis)

    cos_m = math.cos(m)
    sin_m = math.sin(m)

    # Normalize the weight tile once per class tile; reused for every batch
    # tile (the weight block index is constant along the inner axis).
    @pl.when(i == 0)
    def _():
        w = w_ref[...].astype(jnp.float32)                 # (tn, K)
        ssq = jnp.sum(w * w, axis=-1, keepdims=True)
        wn_ref[...] = (w * lax.rsqrt(jnp.maximum(ssq, 1e-24))
                       ).astype(wn_ref.dtype)

    if x_resident:
        row0 = pl.multiple_of(i * tm, tm)
        xn = xn_ref[pl.ds(row0, tm), :]                    # (tm, K) bf16
    else:
        xn = xn_ref[...]                                   # (tm, K) bf16

    # cosine1 = normalize(x) @ normalize(W).T  (bf16 in, f32 accumulate, MXU).
    # Contracting both minor dims is natively supported (q@k^T pattern).
    cos1 = lax.dot_general(xn, wn_ref[...], (((1,), (1,)), ((), ())),
                           preferred_element_type=jnp.float32)  # (tm, tn)

    # One SMEM scalar decides whether this tile needs the margin epilogue.
    tile_has_label = has_ref[i * nc + j] > 0

    @pl.when(jnp.logical_not(tile_has_label))
    def _():
        o_ref[...] = (s * cos1).astype(o_ref.dtype)

    @pl.when(tile_has_label)
    def _():
        labels = lab_ref[...]                              # (tm, 1) int32
        col = j * tn + lax.broadcasted_iota(jnp.int32, cos1.shape, 1)
        mask = col == labels                               # one-hot column
        # cos(acos(c) + m) = c*cos(m) - sqrt(1-c^2)*sin(m); clamp so bf16
        # rounding past +/-1 never feeds sqrt a negative argument.
        c = jnp.clip(cos1, -1.0, 1.0)
        shifted = c * cos_m - jnp.sqrt(jnp.maximum(1.0 - c * c, 0.0)) * sin_m
        o_ref[...] = (s * jnp.where(mask, shifted, cos1)).astype(o_ref.dtype)


def arcface_forward(x, weight, labels, *, s=4.0, m=0.5,
                    block_m=256, block_n=1024,
                    out_dtype=jnp.float32,
                    x_resident_limit_bytes=8 << 20,
                    vmem_budget_cap_bytes=32 << 20):
    """ArcFace forward: x (B, in_dim), weight (out_dim, in_dim), labels (B,)."""
    B, in_dim = x.shape
    out_dim, in_dim_w = weight.shape
    assert in_dim == in_dim_w

    w_bytes = jnp.dtype(weight.dtype).itemsize
    o_bytes = jnp.dtype(out_dtype).itemsize

    # --- tile selection with explicit VMEM budget (v7x has 64 MiB) ----------
    tm = min(block_m, _round_up(B, 8))
    tn = min(block_n, _round_up(out_dim, 128))
    x_resident = 2 * _round_up(B, tm) * in_dim * 2 <= x_resident_limit_bytes

    def _budget(tm_, tn_):
        bp_ = _round_up(B, tm_)
        xb = 2 * (bp_ if x_resident else tm_) * in_dim * 2   # bf16 xn
        wb = 2 * tn_ * in_dim * w_bytes                       # weight stream
        sc = tn_ * in_dim * 2                                 # wn scratch
        ob = 2 * tm_ * tn_ * o_bytes                          # output stream
        return xb + wb + sc + ob

    while _budget(tm, tn) > vmem_budget_cap_bytes and tn > 128:
        tn = max(128, (tn // 2) // 128 * 128)
    while _budget(tm, tn) > vmem_budget_cap_bytes and tm > 8:
        tm = max(8, (tm // 2) // 8 * 8)

    bp = _round_up(B, tm)
    np_ = _round_up(out_dim, tn)
    nb, nc = bp // tm, np_ // tn
    vmem_limit = int(min(max(int(_budget(tm, tn) * 1.5), 32 << 20), 64 << 20))

    # --- host-side prep ------------------------------------------------------
    xp = jnp.pad(x, ((0, bp - B), (0, 0))) if bp != B else x
    xn = _normalize_rows(xp, tile_rows=tm)                  # Pallas prep kernel

    wp = (jnp.pad(weight, ((0, np_ - out_dim), (0, 0)))
          if np_ != out_dim else weight)

    lab = labels.astype(jnp.int32)
    labp = jnp.pad(lab, (0, bp - B), constant_values=-1) if bp != B else lab
    lab2d = labp.reshape(bp, 1)

    # (nb*nc,) int32 table: does batch tile i contain a label in class tile j?
    valid = (labp >= 0) & (labp < out_dim)
    lab_tile = jnp.where(valid, labp, 0) // tn
    b_tile = jnp.arange(bp, dtype=jnp.int32) // tm
    has = jnp.zeros((nb * nc,), jnp.int32).at[b_tile * nc + lab_tile].max(
        valid.astype(jnp.int32))

    # --- main kernel ---------------------------------------------------------
    kernel = functools.partial(_arcface_kernel, s=float(s), m=float(m),
                               tm=tm, tn=tn, nc=nc, x_resident=x_resident)

    if x_resident:
        x_spec = pl.BlockSpec((bp, in_dim), lambda j, i, has: (0, 0))
    else:
        x_spec = pl.BlockSpec((tm, in_dim), lambda j, i, has: (i, 0))

    out = pl.pallas_call(
        kernel,
        out_shape=jax.ShapeDtypeStruct((bp, np_), out_dtype),
        grid_spec=pltpu.PrefetchScalarGridSpec(
            num_scalar_prefetch=1,
            grid=(nc, nb),                       # class tiles OUTER, batch INNER
            in_specs=[
                x_spec,                                                # xn bf16
                pl.BlockSpec((tn, in_dim), lambda j, i, has: (j, 0)),  # weight
                pl.BlockSpec((tm, 1), lambda j, i, has: (i, 0)),       # labels
            ],
            out_specs=pl.BlockSpec((tm, tn), lambda j, i, has: (i, j)),
            scratch_shapes=[pltpu.VMEM((tn, in_dim), jnp.bfloat16)],
        ),
        compiler_params=pltpu.CompilerParams(
            dimension_semantics=("parallel", "arbitrary"),
            vmem_limit_bytes=vmem_limit),
    )(has, xn, wp, lab2d)
    return out[:B, :out_dim]


# ---------------------------------------------------------------------------
# Pure-JAX f32 reference mirroring the PyTorch module.
# ---------------------------------------------------------------------------
def _arcface_ref(x, weight, labels, *, s=4.0, m=0.5):
    xn = x / jnp.maximum(jnp.linalg.norm(x, axis=-1, keepdims=True), 1e-12)
    wn = weight / jnp.maximum(
        jnp.linalg.norm(weight, axis=-1, keepdims=True), 1e-12)
    cos1 = xn @ wn.T
    m_hot = jax.nn.one_hot(labels, weight.shape[0], dtype=jnp.float32) * m
    return s * jnp.cos(jnp.arccos(jnp.clip(cos1, -1.0, 1.0)) + m_hot)


def xavier_uniform(key, out_dim, in_dim):
    bound = math.sqrt(6.0 / (in_dim + out_dim))
    return jax.random.uniform(key, (out_dim, in_dim), jnp.float32,
                              minval=-bound, maxval=bound)


if __name__ == "__main__":
    key = jax.random.PRNGKey(0)

    # --- test 1: tiny shapes matching the module's typical use (resident x) --
    B, IN_DIM, OUT_DIM = 8, 32, 16
    kx, kw, kl = jax.random.split(key, 3)
    x = jax.random.normal(kx, (B, IN_DIM), jnp.float32)
    weight = xavier_uniform(kw, OUT_DIM, IN_DIM)
    labels = jax.random.randint(kl, (B,), 0, OUT_DIM, jnp.int32)

    out = arcface_forward(x, weight, labels, s=4.0, m=0.5)
    jax.block_until_ready(out)
    assert out.shape == (B, OUT_DIM) and out.dtype == jnp.float32
    assert bool(jnp.all(jnp.isfinite(out)))
    ref = _arcface_ref(x, weight, labels, s=4.0, m=0.5)
    assert float(jnp.max(jnp.abs(out - ref))) < 0.1

    # --- test 2: multiple batch/class tiles + streamed-x fallback path -------
    B2, IN2, OUT2 = 64, 128, 1536
    kx2, kw2, kl2 = jax.random.split(jax.random.PRNGKey(1), 3)
    x2 = jax.random.normal(kx2, (B2, IN2), jnp.float32)
    w2 = xavier_uniform(kw2, OUT2, IN2)
    lab2 = jax.random.randint(kl2, (B2,), 0, OUT2, jnp.int32)

    out2 = arcface_forward(x2, w2, lab2, s=4.0, m=0.5,
                           block_m=32, block_n=1024,
                           x_resident_limit_bytes=0)   # force streamed-x path
    jax.block_until_ready(out2)
    assert out2.shape == (B2, OUT2)
    ref2 = _arcface_ref(x2, w2, lab2, s=4.0, m=0.5)
    assert float(jnp.max(jnp.abs(out2 - ref2))) < 0.1

    print("KERNEL_OK")
</pallas_src>

<mosaic_0001>
module attributes {stable_mosaic.version = 11 : i64} {
  func.func @_normalize_rows_kernel(%arg0: i32, %arg1: memref<8x32xf32, #tpu.memory_space<vmem>>, %arg2: memref<8x32xbf16, #tpu.memory_space<vmem>>) attributes {dimension_semantics = [#tpu.dimension_semantics<parallel>], iteration_bounds = array<i64: 1>, scalar_prefetch = 0 : i64, scratch_operands = 0 : i64, tpu.core_type = #tpu.core_type<tc>, window_params = [{transform_indices = @transform_0, window_bounds = array<i64: 8, 32>}, {transform_indices = @transform_1, window_bounds = array<i64: 8, 32>}]} {
    %c0 = arith.constant 0 : index
    %c0_0 = arith.constant 0 : index
    %0 = vector.load %arg1[%c0, %c0_0] : memref<8x32xf32, #tpu.memory_space<vmem>>, vector<8x32xf32>
    %1 = arith.mulf %0, %0 : vector<8x32xf32>
    %cst = arith.constant dense<0.000000e+00> : vector<8xf32>
    %2 = vector.multi_reduction <add>, %1, %cst [1] : vector<8x32xf32> to vector<8xf32>
    %3 = vector.shape_cast %2 : vector<8xf32> to vector<8x1xf32>
    %cst_1 = arith.constant 1.000000e-24 : f32
    %4 = vector.broadcast %cst_1 : f32 to vector<8x1xf32>
    %5 = arith.maximumf %3, %4 : vector<8x1xf32>
    %6 = math.rsqrt %5 : vector<8x1xf32>
    %7 = vector.broadcast %6 : vector<8x1xf32> to vector<8x32xf32>
    %8 = arith.mulf %0, %7 : vector<8x32xf32>
    %9 = arith.truncf %8 : vector<8x32xf32> to vector<8x32xbf16>
    %c0_2 = arith.constant 0 : index
    %c0_3 = arith.constant 0 : index
    %10 = vector.load %arg2[%c0_2, %c0_3] : memref<8x32xbf16, #tpu.memory_space<vmem>>, vector<8x32xbf16>
    tpu.vector_store %arg2[%c0_2, %c0_3], %9 {strides = array<i32>} : memref<8x32xbf16, #tpu.memory_space<vmem>>, vector<8x32xbf16>,
    return
  }
  func.func @transform_0(%arg0: i32) -> (i32, i32) {
    %c0_i32 = arith.constant 0 : i32
    %c0_i32_0 = arith.constant 0 : i32
    return %arg0, %c0_i32 : i32, i32
  }
  func.func @transform_1(%arg0: i32) -> (i32, i32) {
    %c0_i32 = arith.constant 0 : i32
    %c0_i32_0 = arith.constant 0 : i32
    return %arg0, %c0_i32 : i32, i32
  }
}

</mosaic_0001>

<bundles_post_ra>
// kernel: tpu_custom_call.1
= control target key start
LH: loop header
LB: loop body
LE: loop exit
PB: predicated region body
PF: predicated region fallthrough
CT: control target
= control target key end

     0   :  { %6 = vsyncpa [#allocation3], 0  ;;  %s135_s0 = inlined_call_operand.hbm [shape: f32[8,32], index: 0, kind: input, shape index: {}]   ;;  %s136_s1 = inlined_call_operand.hbm [shape: bf16[8,32], index: 1, kind: output, shape index: {}]  }
   0x1   :  { %7 = vsyncpa [#allocation4], 0  ;;  %s13_s8 = sshll.u32 %s135_s0, 4  ;;  %s117_s9 = smov [#allocation2]   ;;  %s14_s8 = int_to_ptr.hbm [resolvable:$true] %s13_s8 }
   0x2   :  { %s15_s10 = sshll.u32 %s117_s9, 4  ;;  %s16_s10 = int_to_ptr.vmem [resolvable:$true] %s15_s10 }
   0x3   :  { %18 = dma.hbm_to_vmem [thread:$0]  %s14_s8, 128, %s16_s10, [#allocation3]  }
   0x4   :  { %113 = dma.done.wait [#allocation3], 128  }
   0x5   :  { %114 = vsyncadd [#allocation3], 4294967168  ;;  %v23_v0 = vld [vmem:[#allocation2] sm:$0xff]  ;;  %vm25_vm0 = vcmask 261120   ;;  %s118_s0 = smov [#allocation5]   ;;  %s51_s14 = sshll.u32 %s136_s1, 4  ;;  %s52_s14 = int_to_ptr.hbm [resolvable:$true] %s51_s14 }
   0x6   :  { %v24_v1 = vmul.f32 %v23_v0, %v23_v0  ;;  %s49_s11 = sshll.u32 %s118_s0, 4  ;;  %vm42_vm4 = vcmask 257024   ;;  %s50_s11 = int_to_ptr.vmem [resolvable:$true] %s49_s11 }
   0x8   :  { %v26_v2 = vsel %vm25_vm0, %v24_v1, 0.0 }
   0x9   :  { %27 = vadd.xlane.f32.xlu0 %v26_v2 }
  0x7c   :  { %v28_v3 = vpop.xlane.xlu0 %27 }
  0x7d   :  { %v29_v4 = vmax.f32 %v28_v3, 1e-24 }
  0x7f   :  { %63 = vrsqrt.f32 %v29_v4  ;;  %vm36_vm2 = vweird.f32 %v29_v4 }
  0x85   :  { %v64_v5 = vpop.eup %63 }
  0x86   :  { %v31_v6 = vmul.f32 %v64_v5, %v29_v4  ;;  %vm37_vm1 = vweird.f32 %v64_v5 }
  0x87   :  { %vm38_vm3 = vmor %vm36_vm2, %vm37_vm1 }
  0x88   :  { %v32_v7 = vmul.f32 %v64_v5, %v31_v6 }
  0x8a   :  { %v33_v8 = vmul.f32 0.5, %v32_v7 }
  0x8c   :  { %v34_v9 = vsub.f32 1.5, %v33_v8 }
  0x8e   :  { %v35_v10 = vmul.f32 %v64_v5, %v34_v9 }
  0x90   :  { %v39_v11 = vsel %vm38_vm3, %v64_v5, %v35_v10 }
  0x91   :  { %v40_v12 = vmul.f32 %v39_v11, %v23_v0 }
  0x93   :  { %v41_v13 = vpack.c.bf16 %v40_v12, %v40_v12 }
  0x95   :  { %43 = vst.msk [vmem:[#allocation5] sm:$0xf] %vm42_vm4, %v41_v13 }
  0x96   :  { %54 = dma.vmem_to_hbm [thread:$0]  %s50_s11, 64, %s52_s14, [#allocation4]  }
  0x97   :  { %115 = dma.done.wait [#allocation4], 64  }
  0x98   :  { %116 = vsyncadd [#allocation4], 4294967232 }
  0x99   :  { %59 = vsyncpa [#allocation3], 1 }
  0x9a   :  { %60 = vsyncpa [#allocation4], 1 }

</bundles_post_ra>
